<compile_context>
chip_gen: v7x
topology: tpu7x:2x2x1
jax: 0.10.0
libtpu: 0.0.40
codegen_flags: <defaults>
</compile_context>

<pallas_src>
import math

import jax
import jax.numpy as jnp
from jax.experimental import pallas as pl
from jax.experimental.pallas import tpu as pltpu


def _round_up(x, m):
    return ((x + m - 1) // m) * m


def _simplenet_kernel(xp_ref, w1p_ref, b1p_ref, w2p_ref, b2_ref, o_ref):
    # xp_ref: (T, PACK*D)  packed batch tile (16 samples per row)
    # w1p_ref: (PACK*D, PACK*H) block-diag W1 ; b1p_ref: (1, PACK*H)
    # w2p_ref: (PACK*H, PACK)   block-diag W2 ; b2_ref: (1,) scalar in SMEM
    h = jnp.dot(xp_ref[...], w1p_ref[...], preferred_element_type=jnp.float32)
    h = jnp.maximum(h + b1p_ref[...], 0.0)                     # Linear1 + ReLU
    z = jnp.dot(h, w2p_ref[...], preferred_element_type=jnp.float32)
    z = z + b2_ref[0]                                          # Linear2 bias
    o_ref[...] = 1.0 / (1.0 + jnp.exp(-z))                     # Sigmoid


def simplenet_forward(x, w1, b1, w2, b2, *, pack=16, tile_rows=512):
    """x: (N, D) float32 -> (N,) float32 (matches torch .squeeze() for N > 1)."""
    n, d = x.shape
    hdim = w1.shape[1]
    p = pack

    # ---- wrapper-side (free / tiny) layout plumbing --------------------------
    np_raw = -(-n // p)                                   # packed rows needed
    t = _round_up(min(tile_rows, _round_up(np_raw, 8)), 8)
    np_rows = _round_up(np_raw, t)                        # rows, multiple of tile
    n_pad = np_rows * p
    if n_pad != n:
        x = jnp.pad(x, ((0, n_pad - n), (0, 0)))
    xp = x.reshape(np_rows, p * d)                        # free row-major reshape

    eye = jnp.eye(p, dtype=x.dtype)
    w1p = jnp.kron(eye, w1)                               # (p*d, p*hdim) block-diag
    w2p = jnp.kron(eye, w2)                               # (p*hdim, p)   block-diag
    b1p = jnp.tile(b1.reshape(1, hdim), (1, p))           # (1, p*hdim)
    b2s = b2.reshape(1).astype(jnp.float32)               # scalar -> SMEM

    grid = (np_rows // t,)
    out = pl.pallas_call(
        _simplenet_kernel,
        out_shape=jax.ShapeDtypeStruct((np_rows, p), jnp.float32),
        grid=grid,
        in_specs=[
            pl.BlockSpec((t, p * d), lambda i: (i, 0)),            # x tile (pipelined)
            pl.BlockSpec((p * d, p * hdim), lambda i: (0, 0)),     # W1' resident
            pl.BlockSpec((1, p * hdim), lambda i: (0, 0)),         # b1' resident
            pl.BlockSpec((p * hdim, p), lambda i: (0, 0)),         # W2' resident
            pl.BlockSpec(memory_space=pltpu.MemorySpace.SMEM),     # b2 scalar
        ],
        out_specs=pl.BlockSpec((t, p), lambda i: (i, 0)),
        compiler_params=pltpu.CompilerParams(
            dimension_semantics=("parallel",),
            vmem_limit_bytes=32 * 1024 * 1024,
        ),
    )(xp, w1p, b1p, w2p, b2s)

    y = out.reshape(-1)[:n]
    # torch .squeeze() removes all size-1 dims -> scalar when N == 1.
    return y[0] if n == 1 else y


def init_params(key, input_dim, hidden=8, out=1):
    """Deterministic init mimicking torch.nn.Linear default (U[-1/sqrt(fan_in), +])."""
    k1, k2, k3, k4 = jax.random.split(key, 4)
    bound1 = 1.0 / math.sqrt(input_dim)
    bound2 = 1.0 / math.sqrt(hidden)
    w1 = jax.random.uniform(k1, (input_dim, hidden), jnp.float32, -bound1, bound1)
    b1 = jax.random.uniform(k2, (hidden,), jnp.float32, -bound1, bound1)
    w2 = jax.random.uniform(k3, (hidden, out), jnp.float32, -bound2, bound2)
    b2 = jax.random.uniform(k4, (out,), jnp.float32, -bound2, bound2)
    return w1, b1, w2, b2


if __name__ == "__main__":
    key = jax.random.PRNGKey(0)
    kx, kp = jax.random.split(key)

    batch, input_dim = 1000, 32            # small; exercises padding + 4-step grid
    x = jax.random.normal(kx, (batch, input_dim), dtype=jnp.float32)
    w1, b1, w2, b2 = init_params(kp, input_dim)

    y = simplenet_forward(x, w1, b1, w2, b2, tile_rows=16)
    jax.block_until_ready(y)

    # Reference check in plain JAX.
    hp = jax.lax.Precision.HIGHEST
    h_ref = jnp.maximum(jnp.dot(x, w1, precision=hp) + b1, 0.0)
    y_ref = jnp.squeeze(jax.nn.sigmoid(jnp.dot(h_ref, w2, precision=hp) + b2))
    assert y.shape == (batch,)
    assert jnp.allclose(y, y_ref, atol=1e-3, rtol=1e-3), "mismatch vs reference"

    print("KERNEL_OK")
</pallas_src>

<mosaic_0001>
module attributes {stable_mosaic.version = 11 : i64} {
  func.func @_simplenet_kernel(%arg0: i32, %arg1: memref<16x512xf32, #tpu.memory_space<vmem>>, %arg2: memref<512x128xf32, #tpu.memory_space<vmem>>, %arg3: memref<1x128xf32, #tpu.memory_space<vmem>>, %arg4: memref<128x16xf32, #tpu.memory_space<vmem>>, %arg5: memref<1xf32, #tpu.memory_space<smem>>, %arg6: memref<16x16xf32, #tpu.memory_space<vmem>>) attributes {dimension_semantics = [#tpu.dimension_semantics<parallel>], iteration_bounds = array<i64: 4>, scalar_prefetch = 0 : i64, scratch_operands = 0 : i64, tpu.core_type = #tpu.core_type<tc>, window_params = [{transform_indices = @transform_0, window_bounds = array<i64: 16, 512>}, {pipeline_mode = #tpu.pipeline_mode<synchronous>, transform_indices = @transform_1, window_bounds = array<i64: 512, 128>}, {pipeline_mode = #tpu.pipeline_mode<synchronous>, transform_indices = @transform_2, window_bounds = array<i64: 1, 128>}, {pipeline_mode = #tpu.pipeline_mode<synchronous>, transform_indices = @transform_3, window_bounds = array<i64: 128, 16>}, {transform_indices = @transform_4, window_bounds = array<i64: 1>}, {transform_indices = @transform_5, window_bounds = array<i64: 16, 16>}]} {
    %c0 = arith.constant 0 : index
    %c0_0 = arith.constant 0 : index
    %0 = vector.load %arg1[%c0, %c0_0] : memref<16x512xf32, #tpu.memory_space<vmem>>, vector<16x512xf32>
    %c0_1 = arith.constant 0 : index
    %c0_2 = arith.constant 0 : index
    %1 = vector.load %arg2[%c0_1, %c0_2] : memref<512x128xf32, #tpu.memory_space<vmem>>, vector<512x128xf32>
    %cst = arith.constant dense<0.000000e+00> : vector<16x128xf32>
    %2 = tpu.matmul %0, %1, %cst {dimension_numbers = #tpu.dot_dimension_numbers<[1], [0], [0], [1], [0, 0, 1, 1], [], []>} : vector<16x512xf32>, vector<512x128xf32>, vector<16x128xf32> -> vector<16x128xf32>
    %c0_3 = arith.constant 0 : index
    %c0_4 = arith.constant 0 : index
    %3 = vector.load %arg3[%c0_3, %c0_4] : memref<1x128xf32, #tpu.memory_space<vmem>>, vector<1x128xf32>
    %4 = vector.broadcast %3 : vector<1x128xf32> to vector<16x128xf32>
    %5 = arith.addf %2, %4 : vector<16x128xf32>
    %cst_5 = arith.constant 0.000000e+00 : f32
    %6 = vector.broadcast %cst_5 : f32 to vector<16x128xf32>
    %7 = arith.maximumf %5, %6 : vector<16x128xf32>
    %c0_6 = arith.constant 0 : index
    %c0_7 = arith.constant 0 : index
    %8 = vector.load %arg4[%c0_6, %c0_7] : memref<128x16xf32, #tpu.memory_space<vmem>>, vector<128x16xf32>
    %cst_8 = arith.constant dense<0.000000e+00> : vector<16x16xf32>
    %9 = tpu.matmul %7, %8, %cst_8 {dimension_numbers = #tpu.dot_dimension_numbers<[1], [0], [0], [1], [0, 0, 1, 1], [], []>} : vector<16x128xf32>, vector<128x16xf32>, vector<16x16xf32> -> vector<16x16xf32>
    %c0_9 = arith.constant 0 : index
    %10 = memref.load %arg5[%c0_9] : memref<1xf32, #tpu.memory_space<smem>>
    %11 = vector.broadcast %10 : f32 to vector<16x16xf32>
    %12 = arith.addf %9, %11 : vector<16x16xf32>
    %cst_10 = arith.constant 0.000000e+00 : f32
    %13 = vector.broadcast %cst_10 : f32 to vector<16x16xf32>
    %14 = arith.subf %13, %12 : vector<16x16xf32>
    %15 = math.exp %14 : vector<16x16xf32>
    %cst_11 = arith.constant 1.000000e+00 : f32
    %16 = vector.broadcast %cst_11 : f32 to vector<16x16xf32>
    %17 = arith.addf %16, %15 : vector<16x16xf32>
    %cst_12 = arith.constant 1.000000e+00 : f32
    %18 = vector.broadcast %cst_12 : f32 to vector<16x16xf32>
    %19 = arith.divf %18, %17 : vector<16x16xf32>
    %c0_13 = arith.constant 0 : index
    %c0_14 = arith.constant 0 : index
    %20 = vector.load %arg6[%c0_13, %c0_14] : memref<16x16xf32, #tpu.memory_space<vmem>>, vector<16x16xf32>
    tpu.vector_store %arg6[%c0_13, %c0_14], %19 {strides = array<i32>} : memref<16x16xf32, #tpu.memory_space<vmem>>, vector<16x16xf32>,
    return
  }
  func.func @transform_0(%arg0: i32) -> (i32, i32) {
    %c0_i32 = arith.constant 0 : i32
    %c0_i32_0 = arith.constant 0 : i32
    return %arg0, %c0_i32 : i32, i32
  }
  func.func @transform_1(%arg0: i32) -> (i32, i32) {
    %c0_i32 = arith.constant 0 : i32
    %c0_i32_0 = arith.constant 0 : i32
    %c0_i32_1 = arith.constant 0 : i32
    return %c0_i32, %c0_i32_0 : i32, i32
  }
  func.func @transform_2(%arg0: i32) -> (i32, i32) {
    %c0_i32 = arith.constant 0 : i32
    %c0_i32_0 = arith.constant 0 : i32
    %c0_i32_1 = arith.constant 0 : i32
    return %c0_i32, %c0_i32_0 : i32, i32
  }
  func.func @transform_3(%arg0: i32) -> (i32, i32) {
    %c0_i32 = arith.constant 0 : i32
    %c0_i32_0 = arith.constant 0 : i32
    %c0_i32_1 = arith.constant 0 : i32
    return %c0_i32, %c0_i32_0 : i32, i32
  }
  func.func @transform_4(%arg0: i32) -> i32 {
    %c0_i32 = arith.constant 0 : i32
    %c0_i32_0 = arith.constant 0 : i32
    return %c0_i32 : i32
  }
  func.func @transform_5(%arg0: i32) -> (i32, i32) {
    %c0_i32 = arith.constant 0 : i32
    %c0_i32_0 = arith.constant 0 : i32
    return %arg0, %c0_i32 : i32, i32
  }
}

</mosaic_0001>

<bundles_post_ra>
// kernel: tpu_custom_call.1
= control target key start
LH: loop header
LB: loop body
LE: loop exit
PB: predicated region body
PF: predicated region fallthrough
CT: control target
= control target key end

     0   :  { %s1329_s0 = inlined_call_operand.hbm [shape: f32[64,512], index: 0, kind: input, shape index: {}]   ;;  %s1330_s1 = inlined_call_operand.hbm [shape: f32[512,128], index: 1, kind: input, shape index: {}]   ;;  %s1331_s2 = inlined_call_operand.vmem [shape: f32[1,128], index: 2, kind: input, shape index: {}]   ;;  %s1332_s3 = inlined_call_operand.vmem [shape: f32[128,16], index: 3, kind: input, shape index: {}]   ;;  %s1333_s4 = inlined_call_operand.<no memory space> [shape: f32[1], index: 4, kind: input, shape index: {}]   ;;  %s1334_s5 = inlined_call_operand.vmem [shape: f32[64,16], index: 5, kind: output, shape index: {}]  }
   0x1   :  { %10 = sst [smem:[#allocation2]] %s1333_s4 }
   0x2   :  { %11 = vsyncpa [#allocation4], 0 }
   0x3   :  { %13 = vsyncpa [#allocation4 + $0x1], 0 }
   0x4   :  { %14 = vsyncpa [#allocation6], 0  ;;  %s1123_s20 = smov 0   ;;  %s1125_s21 = smov 0  }
   0x5   :  { %s1127_s22 = smov 0   ;;  %s1129_s23 = smov 0  }
   0x6 LB: > { %s680_s4 = sadd.s32 4294967295, %s1082_s23   ;;  %p40_p0 = scmp.ne.s32.totalorder %s1074_s21, %s1070_s20  ;;  %s1082_s23 = sphi %s1129_s23, %s1351_s23   ;;  %s1078_s22 = sphi %s1127_s22, %s1350_s22   ;;  %s1074_s21 = sphi %s1125_s21, %s1349_s21   ;;  %s1070_s20 = sphi %s1123_s20, %s1348_s20  }
   0x7   : > { %p1145_p1 = scmp.eq.s32.totalorder %s680_s4, 0  ;;  %p682_p2 = scmp.ge.s32.totalorder %s1082_s23, 1 }
   0x8   : > { %p161_p3 = scmp.lt.s32.totalorder %s1082_s23, 5  ;;  %s1084_s27 = smov [#allocation5]  }
   0x9   : > { %s1339_s24 = scalar_select %p1145_p1, 1, 0 }
   0xa   : > { %p1153_p4 = por %p1145_p1, %p40_p0  ;;  %p1157_p5 = pnand %p682_p2, %p161_p3 }
   0xb   : > { %s173_s28 = sshll.u32 %s1084_s27, 4  ;;  %s1170_s30 = sadd.s32 1, %s1082_s23   ;;  %s174_s28 = int_to_ptr.vmem [resolvable:$true] %s173_s28 }
   0xc   : > { %s1340_s25 = scalar_select %p1153_p4, 1, 0 }
   0xd   : > { %s1341_s26 = scalar_select %p1157_p5, 1, 0 }
   0xe   : > { %p930_p6 = pneg %p1157_p5  ;;  %s27_s6 = sadd.s32 1, %s1078_s22 }
   0xf   : > { %s24_s7 = ssub.s32 %s1082_s23, %s1170_s30  ;;  %s986_s10 = scalar_lea.hbm %s1330_s1, 8192 }
  0x10   : > { %p1165_p7 = pnand %p930_p6, %p1145_p1  ;;  %p987_p8 = scmp.ne.s32.totalorder %s1330_s1, %s986_s10 }
  0x11   : > { %p993_p12 = scmp.lt.u32.totalorder %s986_s10, %s1330_s1 }
  0x12   : > { %p988_p9 = pneg %p1165_p7 }
  0x14   : > { %p989_p10 = pnand %p988_p9, %p987_p8 }
  0x16   : > { %p990_p11 = pneg %p989_p10 }
  0x18   : > { %p995_p13 = pnand %p993_p12, %p990_p11 }
  0x1a   : > { %998 = shalt.err (!%p995_p13)
}
  0x1b   : > { %s999_s15 = scalar_lea.vmem %s174_s28, 8192  ;;  %p1007_p6 = scmp.lt.s32.totalorder %s174_s28, %s174_s28 }
  0x1c   : > { %p1000_p0 = scmp.ne.s32.totalorder %s174_s28, %s999_s15  ;;  %p1008_p1 = scmp.lt.s32.totalorder %s999_s15, %s999_s15 }
  0x1e   : > { %p1002_p2 = pnand %p1000_p0, %p988_p9  ;;  %p1009_p4 = por %p1008_p1, %p1007_p6 }
  0x20   : > { %p1003_p3 = pneg %p1002_p2 }
  0x22   : > { %p1010_p5 = pnand %p1009_p4, %p1003_p3 }
  0x24   : > { %1013 = shalt.err (!%p1010_p5)
}
  0x25   : > { %s1085_s16 = smov 128   ;;  %s1086_s17 = smov 8  }
  0x26   : > { %933 = dma.hbm_to_vmem [thread:$0]  (!%p1165_p7), %s1330_s1, 8192, %s174_s28, [#allocation6], %s1085_s16, %s1085_s16, %s1086_s17  }
  0x27   : > { %p25_p8 = scmp.eq.s32.totalorder %s24_s7, 0  ;;  %p34_p9 = scmp.ne.s32.totalorder %s1078_s22, %s1074_s21 }
  0x28   : > { %p35_p1 = scmp.eq.s32.totalorder %s1082_s23, 0  ;;  %p939_p4 = scmp.lt.s32.totalorder %s1082_s23, 4 }
  0x29   : > { %s1196_s20 = scalar_select %p25_p8, %s1078_s22, %s27_s6  }
  0x2a   : > { %p36_p5 = por %p35_p1, %p34_p9  ;;  %s196_s27 = sand.u32 1, %s1078_s22  }
  0x2b   : > { %s685_s8 = sshll.u32 %s196_s27, 6  ;;  %s698_s9 = sshll.u32 %s1082_s23, 10 }
  0x2c   : > { %s1203_s12 = scalar_lea.hbm %s1329_s0, %s698_s9  ;;  %s200_s28 = scalar_lea.vmem [#allocation3], %s685_s8 }
  0x2d   : > { %s208_s29 = sshll.u32 %s200_s28, 4  ;;  %p1207_p7 = pnand %p939_p4, %p36_p5  ;;  %s1205_s29 = int_to_ptr.vmem [resolvable:$true] %s208_s29 }
  0x2e   : > { %s1211_s7 = scalar_lea.sflag [#allocation4], %s196_s27  ;;  %s1014_s13 = scalar_lea.hbm %s1203_s12, 1024 }
  0x2f   : > { %p1015_p10 = scmp.ne.s32.totalorder %s1203_s12, %s1014_s13  ;;  %p1016_p11 = pneg %p1207_p7 }
  0x30   : > { %s1019_s16 = scalar_lea.hbm %s1329_s0, 4096  ;;  %p1020_p0 = scmp.lt.u32.totalorder %s1203_s12, %s1329_s0 }
  0x31   : > { %p1017_p12 = pnand %p1016_p11, %p1015_p10  ;;  %p1021_p2 = scmp.lt.u32.totalorder %s1019_s16, %s1014_s13 }
  0x32   : > { %p1023_p6 = scmp.lt.u32.totalorder %s1014_s13, %s1203_s12 }
  0x33   : > { %p1018_p13 = pneg %p1017_p12  ;;  %p1022_p3 = por %p1021_p2, %p1020_p0 }
  0x35   : > { %p1024_p8 = por %p1023_p6, %p1022_p3 }
  0x37   : > { %p1025_p9 = pnand %p1024_p8, %p1018_p13 }
  0x39   : > { %1028 = shalt.err (!%p1025_p9)
}
  0x3a   : > { %s1029_s19 = scalar_lea.vmem %s1205_s29, 1024  ;;  %s1087_s27 = smov [#allocation3]  }
  0x3b   : > { %p1030_p1 = scmp.ne.s32.totalorder %s1205_s29, %s1029_s19  ;;  %s1034_s8 = sshll.u32 %s1087_s27, 4  ;;  %s1035_s8 = int_to_ptr.vmem [resolvable:$false] %s1034_s8 }
  0x3c   : > { %s1036_s9 = scalar_lea.vmem %s1035_s8, 2048  ;;  %p1037_p10 = scmp.lt.s32.totalorder %s1205_s29, %s1035_s8 }
  0x3d   : > { %p1032_p4 = pnand %p1030_p1, %p1016_p11  ;;  %p1038_p12 = scmp.lt.s32.totalorder %s1036_s9, %s1029_s19 }
  0x3f   : > { %p1033_p5 = pneg %p1032_p4  ;;  %p1039_p0 = por %p1038_p12, %p1037_p10 }
  0x41   : > { %p1040_p2 = pnand %p1039_p0, %p1033_p5 }
  0x43   : > { %1043 = shalt.err (!%p1040_p2)
}
  0x44   : > { %s1088_s10 = smov 512   ;;  %s1089_s11 = smov 32  }
  0x45   : > { %937 = dma.hbm_to_vmem [thread:$0]  (!%p1207_p7), %s1203_s12, 1024, %s1205_s29, %s1211_s7, %s1088_s10, %s1088_s10, %s1089_s11  }
  0x46   : > { %p1344_p11 = scmp.ne.s32.totalorder %s1341_s26, 0 }
  0x47   : > { %s222_s28 = sand.u32 (!%p1344_p11), 1, %s1074_s21   ;;  %p1345_p13 = scmp.ne.s32.totalorder (!%p1344_p11), %s1340_s25, 0 }
  0x48   : > { %220 = sbr.rel (%p1344_p11) target bundleno = 588 (0x24c), region = 40  ;;  %s690_s13 = sshll.u32 (!%p1344_p11), %s222_s28, 6 }
  0x49   : > { %s223_s14 = scalar_lea.sflag (!%p1344_p11), [#allocation4], %s222_s28  ;;  %s1242_s15 = scalar_lea.vmem (!%p1344_p11), [#allocation3], %s690_s13 }
  0x4f   : > { %1061 = dma.done.wait (%p1345_p13), %s223_s14, 1024  }
  0x50   : > { %1063 = vsyncadd (%p1345_p13), %s223_s14, 4294966272  ;;  %p1346_p3 = scmp.ne.s32.totalorder %s1339_s24, 0 }
  0x52   : > { %1065 = dma.done.wait (%p1346_p3), [#allocation6], 8192  }
  0x53   : > { %1067 = vsyncadd (%p1346_p3), [#allocation6], 4294959104  ;;  %v288_v0 = vld [vmem:[#allocation5 + $0x80] sm:$0xff]  ;;  %v289_v1 = vld [vmem:[#allocation5 + $0x88] sm:$0xff]  ;;  %s511_s10 = sld [smem:[#allocation2]]  ;;  %s692_s11 = sshll.u32 %s680_s4, 1 }
  0x54   : > { %v272_v2 = vld [vmem:[#allocation5] sm:$0xff]  ;;  %v828_v3 = vpack.c.bf16 %v289_v1, %v288_v0  ;;  %v273_v4 = vld [vmem:[#allocation5 + $0x8] sm:$0xff]  ;;  %v290_v11 = vld [vmem:[#allocation5 + $0x90] sm:$0xff]  ;;  %p259_p7 = scmp.lt.s32.totalorder %s692_s11, 7  ;;  %vm600_vm0 = vcmask 130048  }
  0x55   : > { %v320_v5 = vld [vmem:[#allocation5 + $0x180] sm:$0xff]  ;;  %v321_v6 = vld [vmem:[#allocation5 + $0x188] sm:$0xff]  ;;  %v830_v7 = vpack.c.bf16 %v273_v4, %v272_v2  ;;  %v291_v13 = vld [vmem:[#allocation5 + $0x98] sm:$0xff] }
  0x56   : > { %v860_v8 = vpack.c.bf16 %v321_v6, %v320_v5  ;;  %v304_v9 = vld [vmem:[#allocation5 + $0x100] sm:$0xff]  ;;  %v305_v10 = vld [vmem:[#allocation5 + $0x108] sm:$0xff]  ;;  %829 = vmatprep.subr.bf16.mxu0 %v828_v3  ;;  %v274_v14 = vld [vmem:[#allocation5 + $0x10] sm:$0xff]  ;;  %v832_v16 = vpack.c.bf16 %v291_v13, %v290_v11  ;;  %s1353_s11 = smov (!%p259_p7, %s692_s11), 7 }
  0x57   : > { %v862_v12 = vpack.c.bf16 %v305_v10, %v304_v9  ;;  %v275_v15 = vld [vmem:[#allocation5 + $0x18] sm:$0xff]  ;;  %831 = vmatpush3.bf16.msra.mxu0 %v830_v7  ;;  %v322_v18 = vld [vmem:[#allocation5 + $0x190] sm:$0xff]  ;;  %v292_v23 = vld [vmem:[#allocation5 + $0xa0] sm:$0xff]  ;;  %s693_s28 = sshll.u32 %s1353_s11, 3 }
  0x58   : > { %861 = vmatprep.subr.bf16.mxu1 %v860_v8  ;;  %v834_v17 = vpack.c.bf16 %v275_v15, %v274_v14  ;;  %v323_v19 = vld [vmem:[#allocation5 + $0x198] sm:$0xff]  ;;  %v306_v20 = vld [vmem:[#allocation5 + $0x110] sm:$0xff]  ;;  %v293_v24 = vld [vmem:[#allocation5 + $0xa8] sm:$0xff]  ;;  %833 = vmatprep.subr.bf16.mxu0 %v832_v16 }
  0x59   : > { %863 = vmatpush3.bf16.msra.mxu1 %v862_v12  ;;  %v864_v21 = vpack.c.bf16 %v323_v19, %v322_v18  ;;  %v307_v22 = vld [vmem:[#allocation5 + $0x118] sm:$0xff]  ;;  %v836_v26 = vpack.c.bf16 %v293_v24, %v292_v23  ;;  %v276_v27 = vld [vmem:[#allocation5 + $0x20] sm:$0xff]  ;;  %v277_v28 = vld [vmem:[#allocation5 + $0x28] sm:$0xff] }
  0x5a   : > { %v866_v25 = vpack.c.bf16 %v307_v22, %v306_v20  ;;  %v324_v29 = vld [vmem:[#allocation5 + $0x1a0] sm:$0xff]  ;;  %v325_v30 = vld [vmem:[#allocation5 + $0x1a8] sm:$0xff]  ;;  %v838_v33 = vpack.c.bf16 %v277_v28, %v276_v27  ;;  %v294_v35 = vld [vmem:[#allocation5 + $0xb0] sm:$0xff] }
  0x5b   : > { %865 = vmatprep.subr.bf16.mxu1 %v864_v21  ;;  %v308_v31 = vld [vmem:[#allocation5 + $0x120] sm:$0xff]  ;;  %v309_v32 = vld [vmem:[#allocation5 + $0x128] sm:$0xff]  ;;  %835 = vmatpush3.bf16.msra.mxu0 %v834_v17  ;;  %v868_v34 = vpack.c.bf16 %v325_v30, %v324_v29  ;;  %v295_v36 = vld [vmem:[#allocation5 + $0xb8] sm:$0xff] }
  0x5c   : > { %v278_v37 = vld [vmem:[#allocation5 + $0x30] sm:$0xff]  ;;  %837 = vmatprep.subr.bf16.mxu0 %v836_v26  ;;  %v870_v38 = vpack.c.bf16 %v309_v32, %v308_v31  ;;  %v840_v39 = vpack.c.bf16 %v295_v36, %v294_v35  ;;  %v279_v40 = vld [vmem:[#allocation5 + $0x38] sm:$0xff]  ;;  %v296_v46 = vld [vmem:[#allocation5 + $0xc0] sm:$0xff] }
  0x5d   : > { %867 = vmatpush3.bf16.msra.mxu1 %v866_v25  ;;  %v326_v41 = vld [vmem:[#allocation5 + $0x1b0] sm:$0xff]  ;;  %v327_v42 = vld [vmem:[#allocation5 + $0x1b8] sm:$0xff]  ;;  %v297_v47 = vld [vmem:[#allocation5 + $0xc8] sm:$0xff]  ;;  %v842_v48 = vpack.c.bf16 %v279_v40, %v278_v37 }
  0x5e   : > { %869 = vmatprep.subr.bf16.mxu1 %v868_v34  ;;  %v872_v43 = vpack.c.bf16 %v327_v42, %v326_v41  ;;  %v310_v44 = vld [vmem:[#allocation5 + $0x130] sm:$0xff]  ;;  %v311_v45 = vld [vmem:[#allocation5 + $0x138] sm:$0xff]  ;;  %v328_v49 = vld [vmem:[#allocation5 + $0x1c0] sm:$0xff]  ;;  %v844_v52 = vpack.c.bf16 %v297_v47, %v296_v46 }
  0x5f   : > { %839 = vmatpush3.bf16.msra.mxu0 %v838_v33  ;;  %v329_v50 = vld [vmem:[#allocation5 + $0x1c8] sm:$0xff]  ;;  %v874_v51 = vpack.c.bf16 %v311_v45, %v310_v44  ;;  %v280_v53 = vld [vmem:[#allocation5 + $0x40] sm:$0xff]  ;;  %v298_v58 = vld [vmem:[#allocation5 + $0xd0] sm:$0xff] }
  0x60   : > { %841 = vmatprep.subr.bf16.mxu0 %v840_v39  ;;  %v281_v54 = vld [vmem:[#allocation5 + $0x48] sm:$0xff]  ;;  %v312_v55 = vld [vmem:[#allocation5 + $0x140] sm:$0xff]  ;;  %v876_v56 = vpack.c.bf16 %v329_v50, %v328_v49  ;;  %v299_v59 = vld [vmem:[#allocation5 + $0xd8] sm:$0xff] }
  0x61   : > { %871 = vmatpush3.bf16.msra.mxu1 %v870_v38  ;;  %v313_v57 = vld [vmem:[#allocation5 + $0x148] sm:$0xff]  ;;  %v330_v60 = vld [vmem:[#allocation5 + $0x1d0] sm:$0xff]  ;;  %v331_v61 = vld [vmem:[#allocation5 + $0x1d8] sm:$0xff]  ;;  %v846_v62 = vpack.c.bf16 %v281_v54, %v280_v53  ;;  %v848_v0 = vpack.c.bf16 %v299_v59, %v298_v58 }
  0x62   : > { %873 = vmatprep.subr.bf16.mxu1 %v872_v43  ;;  %v878_v63 = vpack.c.bf16 %v313_v57, %v312_v55  ;;  %v282_v1 = vld [vmem:[#allocation5 + $0x50] sm:$0xff]  ;;  %v283_v2 = vld [vmem:[#allocation5 + $0x58] sm:$0xff]  ;;  %v880_v4 = vpack.c.bf16 %v331_v61, %v330_v60  ;;  %v300_v6 = vld [vmem:[#allocation5 + $0xe0] sm:$0xff] }
  0x63   : > { %843 = vmatpush3.bf16.msra.mxu0 %v842_v48  ;;  %v314_v3 = vld [vmem:[#allocation5 + $0x150] sm:$0xff]  ;;  %v315_v5 = vld [vmem:[#allocation5 + $0x158] sm:$0xff]  ;;  %v301_v7 = vld [vmem:[#allocation5 + $0xe8] sm:$0xff]  ;;  %v850_v10 = vpack.c.bf16 %v283_v2, %v282_v1 }
  0x64   : > { %845 = vmatprep.subr.bf16.mxu0 %v844_v52  ;;  %v332_v8 = vld [vmem:[#allocation5 + $0x1e0] sm:$0xff]  ;;  %v333_v9 = vld [vmem:[#allocation5 + $0x1e8] sm:$0xff]  ;;  %v882_v13 = vpack.c.bf16 %v315_v5, %v314_v3  ;;  %v852_v14 = vpack.c.bf16 %v301_v7, %v300_v6  ;;  %v302_v19 = vld [vmem:[#allocation5 + $0xf0] sm:$0xff] }
  0x65   : > { %875 = vmatpush3.bf16.msra.mxu1 %v874_v51  ;;  %v284_v11 = vld [vmem:[#allocation5 + $0x60] sm:$0xff]  ;;  %v285_v12 = vld [vmem:[#allocation5 + $0x68] sm:$0xff]  ;;  %v884_v18 = vpack.c.bf16 %v333_v9, %v332_v8  ;;  %v303_v20 = vld [vmem:[#allocation5 + $0xf8] sm:$0xff] }
  0x66   : > { %877 = vmatprep.subr.bf16.mxu1 %v876_v56  ;;  %v316_v15 = vld [vmem:[#allocation5 + $0x160] sm:$0xff]  ;;  %v317_v16 = vld [vmem:[#allocation5 + $0x168] sm:$0xff]  ;;  %v267_v21 = vld [vmem:[%s1242_s15 + $0x18] sm:$0xff]  ;;  %v854_v24 = vpack.c.bf16 %v285_v12, %v284_v11  ;;  %v856_v26 = vpack.c.bf16 %v303_v20, %v302_v19  ;;  %v512_v19 = vstv %s511_s10 }
  0x67   : > { %847 = vmatpush3.bf16.msra.mxu0 %v846_v62  ;;  %v265_v17 = vld [vmem:[%s1242_s15 + $0x8] sm:$0xff]  ;;  %v334_v22 = vld [vmem:[#allocation5 + $0x1f0] sm:$0xff]  ;;  %v335_v23 = vld [vmem:[#allocation5 + $0x1f8] sm:$0xff]  ;;  %482 = vmatprep.mubr.f32.mxu1 %v267_v21  ;;  %v886_v25 = vpack.c.bf16 %v317_v16, %v316_v15 }
  0x68   : > { %849 = vmatprep.subr.bf16.mxu0 %v848_v0  ;;  %407 = vmatprep.mubr.f32.mxu0 %v265_v17  ;;  %v286_v27 = vld [vmem:[#allocation5 + $0x70] sm:$0xff]  ;;  %v287_v28 = vld [vmem:[#allocation5 + $0x78] sm:$0xff]  ;;  %v888_v30 = vpack.c.bf16 %v335_v23, %v334_v22  ;;  %v495_v32 = vld [vmem:[%s1332_s3] sm:$0xff] }
  0x69   : > { %879 = vmatpush3.bf16.msra.mxu1 %v878_v63  ;;  %v318_v29 = vld [vmem:[#allocation5 + $0x170] sm:$0xff]  ;;  %v319_v31 = vld [vmem:[#allocation5 + $0x178] sm:$0xff]  ;;  %v496_v33 = vld [vmem:[%s1332_s3 + $0x8] sm:$0xff]  ;;  %v858_v34 = vpack.c.bf16 %v287_v28, %v286_v27 }
  0x6a   : > { %881 = vmatprep.subr.bf16.mxu1 %v880_v4  ;;  %v890_v35 = vpack.c.bf16 %v319_v31, %v318_v29  ;;  %v892_v36 = vpack.c.bf16 %v496_v33, %v495_v32  ;;  %v497_v37 = vld [vmem:[%s1332_s3 + $0x10] sm:$0xff]  ;;  %v498_v38 = vld [vmem:[%s1332_s3 + $0x18] sm:$0xff]  ;;  %v264_v39 = vld [vmem:[%s1242_s15] sm:$0xff] }
  0x6b   : > { %851 = vmatpush3.bf16.msra.mxu0 %v850_v10  ;;  %v266_v40 = vld [vmem:[%s1242_s15 + $0x10] sm:$0xff]  ;;  %v269_v41 = vld [vmem:[%s1242_s15 + $0x28] sm:$0xff]  ;;  %v271_v42 = vld [vmem:[%s1242_s15 + $0x38] sm:$0xff]  ;;  %v896_v43 = vpack.c.bf16 %v498_v38, %v497_v37 }
  0x6c   : > { %853 = vmatprep.subr.bf16.mxu0 %v852_v14  ;;  %v499_v44 = vld [vmem:[%s1332_s3 + $0x20] sm:$0xff]  ;;  %v500_v45 = vld [vmem:[%s1332_s3 + $0x28] sm:$0xff]  ;;  %v270_v47 = vld [vmem:[%s1242_s15 + $0x30] sm:$0xff] }
  0x6d   : > { %883 = vmatpush3.bf16.msra.mxu1 %v882_v13  ;;  %v268_v46 = vld [vmem:[%s1242_s15 + $0x20] sm:$0xff]  ;;  %v900_v48 = vpack.c.bf16 %v500_v45, %v499_v44  ;;  %v501_v49 = vld [vmem:[%s1332_s3 + $0x30] sm:$0xff]  ;;  %v502_v50 = vld [vmem:[%s1332_s3 + $0x38] sm:$0xff]  ;;  %s262_s15 = scalar_lea.vmem %s1334_s5, %s693_s28 }
  0x6e   : > { %885 = vmatprep.subr.bf16.mxu1 %v884_v18  ;;  %v904_v51 = vpack.c.bf16 %v502_v50, %v501_v49  ;;  %v503_v52 = vld [vmem:[%s1332_s3 + $0x40] sm:$0xff]  ;;  %v504_v53 = vld [vmem:[%s1332_s3 + $0x48] sm:$0xff]  ;;  %v505_v55 = vld [vmem:[%s1332_s3 + $0x50] sm:$0xff] }
  0x6f   : > { %855 = vmatpush3.bf16.msra.mxu0 %v854_v24  ;;  %v908_v54 = vpack.c.bf16 %v504_v53, %v503_v52  ;;  %v506_v56 = vld [vmem:[%s1332_s3 + $0x58] sm:$0xff]  ;;  %v507_v58 = vld [vmem:[%s1332_s3 + $0x60] sm:$0xff]  ;;  %v508_v59 = vld [vmem:[%s1332_s3 + $0x68] sm:$0xff] }
  0x70   : > { %857 = vmatprep.subr.bf16.mxu0 %v856_v26  ;;  %v912_v57 = vpack.c.bf16 %v506_v56, %v505_v55  ;;  %v916_v60 = vpack.c.bf16 %v508_v59, %v507_v58  ;;  %v509_v61 = vld [vmem:[%s1332_s3 + $0x70] sm:$0xff]  ;;  %v510_v62 = vld [vmem:[%s1332_s3 + $0x78] sm:$0xff]  ;;  %v694_v1 = vld [vmem:[%s1331_s2] ss:$0 sm:$0xff] }
  0x71   : > { %887 = vmatpush3.bf16.msra.mxu1 %v886_v25  ;;  %v920_v63 = vpack.c.bf16 %v510_v62, %v509_v61 }
  0x72   : > { %889 = vmatprep.subr.bf16.mxu1 %v888_v30 }
  0x73   : > { %859 = vmatpush3.bf16.msra.mxu0 %v858_v34 }
  0x74   : > { %893 = vmatprep.subr.bf16.mxu0 %v892_v36 }
  0x75   : > { %891 = vmatpush3.bf16.msra.mxu1 %v890_v35 }
  0x76   : > { %408 = vmatmul.mubr.f32.vlgmr.msra.gmra.mrb[0].mxu0 %v264_v39 }
  0x77   : > { %412 = vmatprep.mubr.f32.mxu0 %v269_v41  ;;  %895 = vmatpush3.bf16.msra.mxu0 %v892_v36 }
  0x78   : > { %483 = vmatmul.mubr.f32.vlgmr.msra.gmra.mrb[0].mxu1 %v266_v40  ;;  %897 = vmatprep.subr.bf16.mxu0 %v896_v43 }
  0x79   : > { %487 = vmatprep.mubr.f32.mxu1 %v271_v42 }
  0x7a   : > { %413 = vmatmul.mubr.f32.gmra.mrb[2].mxu0 %v268_v46 }
  0x7b   : > { %899 = vmatpush3.bf16.msra.mxu0 %v896_v43 }
  0x7c   : > { %488 = vmatmul.mubr.f32.gmra.mrb[2].mxu1 %v270_v47  ;;  %901 = vmatprep.subr.bf16.mxu0 %v900_v48 }
  0x7f   : > { %903 = vmatpush3.bf16.msra.mxu0 %v900_v48 }
  0x80   : > { %905 = vmatprep.subr.bf16.mxu0 %v904_v51 }
  0x83   : > { %907 = vmatpush3.bf16.msra.mxu0 %v904_v51 }
  0x84   : > { %909 = vmatprep.subr.bf16.mxu0 %v908_v54 }
  0x87   : > { %911 = vmatpush3.bf16.msra.mxu0 %v908_v54 }
  0x88   : > { %913 = vmatprep.subr.bf16.mxu0 %v912_v57 }
  0x8b   : > { %915 = vmatpush3.bf16.msra.mxu0 %v912_v57 }
  0x8c   : > { %917 = vmatprep.subr.bf16.mxu0 %v916_v60 }
  0x8f   : > { %919 = vmatpush3.bf16.msra.mxu0 %v916_v60 }
  0x90   : > { %921 = vmatprep.subr.bf16.mxu0 %v920_v63 }
  0x93   : > { %923 = vmatpush3.bf16.msra.mxu0 %v920_v63 }
 0x149   : > { %v731_v0 = vpop.f32.mrb[0].mxu0 }
 0x14a   : > { %v732_v2 = vpop.f32.mrb[1].mxu0 }
 0x14b   : > { %v769_v3 = vpop.f32.mrb[0].mxu1  ;;  %v733_v4 = vadd.f32 %v732_v2, %v731_v0 }
 0x14c   : > { %v770_v5 = vpop.f32.mrb[1].mxu1 }
 0x14d   : > { %v771_v6 = vadd.f32 %v770_v5, %v769_v3  ;;  %v410_v7 = vadd.f32 %v733_v4, %v694_v1  ;;  %v734_v8 = vpop.f32.mrb[2].mxu0 }
 0x14e   : > { %v735_v9 = vpop.f32.mrb[3].mxu0 }
 0x14f   : > { %v772_v10 = vpop.f32.mrb[2].mxu1  ;;  %v485_v11 = vadd.f32 %v771_v6, %v410_v7  ;;  %v736_v12 = vadd.f32 %v735_v9, %v734_v8 }
 0x150   : > { %v773_v13 = vpop.f32.mrb[3].mxu1 }
 0x151   : > { %v774_v14 = vadd.f32 %v773_v13, %v772_v10  ;;  %v493_v15 = vmax.f32 %v485_v11, 0.0  ;;  %v415_v16 = vadd.f32 %v736_v12, %v694_v1 }
 0x153   : > { %v490_v17 = vadd.f32 %v774_v14, %v415_v16  ;;  %825 = vmatprep.mubr.f32.mxu0 %v493_v15 }
 0x155   : > { %v494_v18 = vmax.f32 %v490_v17, 0.0 }
 0x157   : > { %826 = vmatmul.mubr.f32.vlgmr.msra.gmra.mrb[4].mxu0 %v494_v18 }
 0x22a   : > { %v827_v20 = vpop.f32.mrb[4].mxu0 }
 0x22b   : > { %v585_v21 = vadd.f32 %v827_v20, %v512_v19  ;;  %v579_v22 = vpop.f32.mrb[5].mxu0 }
 0x22c   : > { %v580_v23 = vadd.f32 %v579_v22, %v512_v19 }
 0x22d   : > { %v589_v24 = vsub.f32 0.0, %v585_v21 }
 0x22e   : > { %v588_v25 = vsub.f32 0.0, %v580_v23 }
 0x22f   : > { %v592_v26 = vmul.f32 1.442695, %v589_v24 }
 0x230   : > { %v590_v27 = vmul.f32 1.442695, %v588_v25 }
 0x231   : > { %978 = vpow2.f32 %v592_v26 }
 0x232   : > { %980 = vpow2.f32 %v590_v27 }
 0x23b   : > { %v979_v28 = vpop.eup %978 }
 0x23c   : > { %v981_v29 = vpop.eup %980  ;;  %v595_v30 = vadd.f32 1.0, %v979_v28 }
 0x23d   : > { %v594_v31 = vadd.f32 1.0, %v981_v29 }
 0x23f   : > { %982 = vrcp.f32 %v594_v31 }
 0x240   : > { %984 = vrcp.f32 %v595_v30 }
 0x249   : > { %v983_v32 = vpop.eup %982 }
 0x24a   : > { %v985_v33 = vpop.eup %984  ;;  %601 = vst.msk [vmem:[%s262_s15] sm:$0xff] %vm600_vm0, %v983_v32 }
 0x24b   : > { %602 = vst.msk [vmem:[%s262_s15 + $0x8] sm:$0xff] %vm600_vm0, %v985_v33 }
 0x24c PF: > { %s1347_s23 = smov %s1196_s20  ;;  %p17_p6 = scmp.ge.s32.totalorder %s1170_s30, 6  }
 0x24d   : > { %s1348_s20 = smov %s1074_s21  ;;  %s1349_s21 = smov %s1078_s22 }
 0x24e   : > { %s1350_s22 = smov %s1347_s23  ;;  %s1351_s23 = smov %s1170_s30 }
 0x24f   :  { %19 = sbr.rel (!%p17_p6) target bundleno = 6 (0x6), region = 84 }
 0x256   :  { %625 = vsyncpa [#allocation4], 1 }
 0x257   :  { %627 = vsyncpa [#allocation4 + $0x1], 1 }
 0x258   :  { %628 = vsyncpa [#allocation6], 1 }

</bundles_post_ra>
